<compile_context>
chip_gen: v7x
topology: tpu7x:2x2x1
jax: 0.10.0
libtpu: 0.0.40
codegen_flags: <defaults>
</compile_context>

<pallas_src>
import functools

import jax
import jax.numpy as jnp
from jax.experimental import pallas as pl
from jax.experimental.pallas import tpu as pltpu

_HAS_CORE_PARALLEL = hasattr(pltpu, "CORE_PARALLEL") and hasattr(pltpu, "ARBITRARY")


def _device_kind():
    try:
        return jax.devices()[0].device_kind.lower()
    except Exception:
        return ""


def _vmem_capacity_bytes(kind):
    try:
        return int(pltpu.get_tpu_info().vmem_capacity_bytes)
    except Exception:
        pass
    if "v7" in kind or "7x" in kind:
        return 64 * 1024 * 1024
    if "v4" in kind or "v5" in kind or "v6" in kind:
        return 128 * 1024 * 1024
    return 64 * 1024 * 1024  # conservative default


def _largest_divisor_leq(n, limit):
    limit = max(1, min(n, limit))
    for d in range(limit, 0, -1):
        if n % d == 0:
            return d
    return 1


def _bngelu_kernel(x_ref, gamma_ref, beta_ref, o_ref,
                   sum_ref, sq_ref, a_ref, sh_ref, *,
                   eps, count, hw, tile, needs_mask, approx_gelu):
    """Two-phase kernel over grid (c_block, phase, batch_block, lane_tile).

    phase 0: accumulate per-channel sum / sum-of-squares into VMEM scratch
             over every (batch_block, lane_tile) block of this channel block.
             Ragged last lane tile is masked with an iota guard.
    phase 1: fold completed batch stats + affine into per-channel scale/shift
             once (first phase-1 step), then apply scale/shift + exact GELU
             and write the output tile.  OOB lanes of a ragged last tile are
             never written back (pipeline clips the write).
    """
    p = pl.program_id(1)
    b = pl.program_id(2)
    t = pl.program_id(3)

    @pl.when((p == 0) & (b == 0) & (t == 0))
    def _init():
        sum_ref[...] = jnp.zeros_like(sum_ref)
        sq_ref[...] = jnp.zeros_like(sq_ref)

    @pl.when(p == 0)
    def _accumulate():
        x = x_ref[...].astype(jnp.float32)           # (b_blk, c_blk, tile)
        if needs_mask:
            lane = jax.lax.broadcasted_iota(jnp.int32, x.shape, 2)
            x = jnp.where(t * tile + lane < hw, x, 0.0)
        s = jnp.sum(x, axis=2, keepdims=True)        # (b_blk, c_blk, 1)
        q = jnp.sum(x * x, axis=2, keepdims=True)
        sum_ref[...] += jnp.sum(s, axis=0)           # (c_blk, 1)
        sq_ref[...] += jnp.sum(q, axis=0)

    @pl.when((p == 1) & (b == 0) & (t == 0))
    def _fold_stats():
        # One-time per channel block: fold mean/var/gamma/beta into scale/shift.
        n = jnp.float32(count)                        # true (unmasked) count
        mean = sum_ref[...] / n
        var = jnp.maximum(sq_ref[...] / n - mean * mean, 0.0)  # biased variance
        inv = jax.lax.rsqrt(var + eps)
        a = inv * gamma_ref[...]
        a_ref[...] = a
        sh_ref[...] = beta_ref[...] - mean * a

    @pl.when(p == 1)
    def _normalize():
        x = x_ref[...].astype(jnp.float32)
        y = x * a_ref[...] + sh_ref[...]
        if approx_gelu:
            # Optional tanh approximation (EUP tanh) for VALU-bound regimes (v7x).
            c = jnp.float32(0.7978845608028654)       # sqrt(2/pi)
            out = 0.5 * y * (1.0 + jnp.tanh(c * (y + 0.044715 * y * y * y)))
        else:
            # Exact GELU: 0.5 * y * (1 + erf(y / sqrt(2))) — matches nn.GELU().
            out = 0.5 * y * (1.0 + jax.lax.erf(y * jnp.float32(0.7071067811865476)))
        o_ref[...] = out.astype(o_ref.dtype)


def bngelu(x_nchw, gamma, beta, *, eps=1e-5, approx_gelu=False,
           block_budget_bytes=None):
    """x_nchw: [B, C, H, W]; gamma, beta: [C]. Returns [B, C, H, W]."""
    B, C, H, W = x_nchw.shape
    hw = H * W
    count = B * hw                                    # true per-channel count
    itemsize = x_nchw.dtype.itemsize

    kind = _device_kind()
    is_v7 = ("v7" in kind) or ("7x" in kind)
    vmem_cap = _vmem_capacity_bytes(kind)
    # Leave headroom for compiler-internal scratch; cap at ~100 MiB on big-VMEM chips.
    vmem_limit = int(max(16 << 20, min(vmem_cap - (16 << 20), 100 << 20)))
    if block_budget_bytes is None:
        block_budget = (int(vmem_limit * 0.8)) // 4   # in+out, double-buffered
    else:
        block_budget = int(block_budget_bytes)        # test/override hook

    # Channel split only when it can be shared across TensorCores (v7x) and it
    # keeps the dtype's sublane tiling legal: 8 (f32) / 16 (bf16) / 32 (int8).
    sublane = {4: 8, 2: 16, 1: 32}.get(itemsize, 8)
    n_c, c_blk, core_split = 1, C, False
    if is_v7 and _HAS_CORE_PARALLEL and C % (2 * sublane) == 0:
        n_c, c_blk, core_split = 2, C // 2, True

    # Lane tile / batch packing, budget driven (never collapses to 128 lanes
    # unless the budget truly forces it).
    row_bytes = c_blk * hw * itemsize
    if row_bytes <= block_budget:
        # Full spatial row per block (also the single-HBM-read fast path when
        # the whole batch fits: input block index is then phase-independent).
        tile, n_t = hw, 1
        b_cap = max(1, block_budget // max(1, row_bytes))
        b_blk = _largest_divisor_leq(B, b_cap)
        n_b = B // b_blk
    else:
        max_lanes = block_budget // max(1, c_blk * itemsize)
        tile = max(128, (max_lanes // 128) * 128)
        n_t = -(-hw // tile)                           # cdiv; last tile may be ragged
        b_blk, n_b = 1, B
    needs_mask = (n_t * tile) != hw

    # Free, contiguous reshape only — no padding, no trailing slice.
    x3 = x_nchw.reshape(B, C, hw)
    gamma2d = gamma.reshape(C, 1).astype(jnp.float32)
    beta2d = beta.reshape(C, 1).astype(jnp.float32)

    kernel = functools.partial(
        _bngelu_kernel, eps=float(eps), count=float(count), hw=hw, tile=tile,
        needs_mask=needs_mask, approx_gelu=bool(approx_gelu))

    if core_split:
        dims = (pltpu.CORE_PARALLEL, pltpu.ARBITRARY, pltpu.ARBITRARY,
                pltpu.ARBITRARY)
    else:
        dims = ("parallel", "arbitrary", "arbitrary", "arbitrary")

    out3 = pl.pallas_call(
        kernel,
        out_shape=jax.ShapeDtypeStruct((B, C, hw), x_nchw.dtype),
        grid_spec=pltpu.PrefetchScalarGridSpec(
            num_scalar_prefetch=0,
            grid=(n_c, 2, n_b, n_t),
            in_specs=[
                pl.BlockSpec((b_blk, c_blk, tile), lambda c, p, b, t: (b, c, t)),
                pl.BlockSpec((c_blk, 1), lambda c, p, b, t: (c, 0)),
                pl.BlockSpec((c_blk, 1), lambda c, p, b, t: (c, 0)),
            ],
            # Output block index is held constant during phase 0 (it equals the
            # first phase-1 block), so the uninitialized output buffer is never
            # written back to HBM during the stats pass.
            out_specs=pl.BlockSpec((b_blk, c_blk, tile),
                                   lambda c, p, b, t: (b * p, c, t * p)),
            scratch_shapes=[
                pltpu.VMEM((c_blk, 1), jnp.float32),   # per-channel sum
                pltpu.VMEM((c_blk, 1), jnp.float32),   # per-channel sum of squares
                pltpu.VMEM((c_blk, 1), jnp.float32),   # folded scale  a = gamma * rsqrt(var+eps)
                pltpu.VMEM((c_blk, 1), jnp.float32),   # folded shift  sh = beta - mean * a
            ],
        ),
        compiler_params=pltpu.CompilerParams(
            dimension_semantics=dims,
            vmem_limit_bytes=vmem_limit,
        ),
    )(x3, gamma2d, beta2d)

    return out3.reshape(B, C, H, W)


def _reference(x_nchw, gamma, beta, eps=1e-5):
    x = x_nchw.astype(jnp.float32)
    mean = jnp.mean(x, axis=(0, 2, 3), keepdims=True)
    var = jnp.mean((x - mean) ** 2, axis=(0, 2, 3), keepdims=True)
    y = (x - mean) * jax.lax.rsqrt(var + eps)
    y = y * gamma.reshape(1, -1, 1, 1) + beta.reshape(1, -1, 1, 1)
    out = 0.5 * y * (1.0 + jax.lax.erf(y / jnp.sqrt(2.0)))
    return out.astype(x_nchw.dtype)


if __name__ == "__main__":
    key = jax.random.PRNGKey(0)
    kx, kg, kb = jax.random.split(key, 3)

    def run_case(shape, block_budget_bytes=None):
        B, C, H, W = shape
        x = jax.random.normal(kx, shape, dtype=jnp.float32)
        gamma = 1.0 + 0.1 * jax.random.normal(kg, (C,), dtype=jnp.float32)
        beta = 0.1 * jax.random.normal(kb, (C,), dtype=jnp.float32)
        out = jax.block_until_ready(
            bngelu(x, gamma, beta, block_budget_bytes=block_budget_bytes))
        ref = _reference(x, gamma, beta)
        assert out.shape == shape
        err = float(jnp.max(jnp.abs(out - ref)))
        assert err < 1e-4, f"mismatch vs reference ({err}) for shape {shape}"

    # Fast path: whole slab resident in VMEM -> single HBM read + single write.
    run_case((2, 4, 16, 16))
    # Ragged H*W (35): full-extent lane block, no pad / no trailing slice.
    run_case((2, 8, 5, 7))
    # Forced small block budget: multi-tile lane axis with masked ragged last tile.
    run_case((2, 8, 6, 50), block_budget_bytes=4096)

    print("KERNEL_OK")
</pallas_src>

<mosaic_0001>
module attributes {stable_mosaic.version = 11 : i64} {
  func.func @_bngelu_kernel(%arg0: i32, %arg1: i32, %arg2: i32, %arg3: i32, %arg4: memref<2x4x256xf32, #tpu.memory_space<vmem>>, %arg5: memref<4x1xf32, #tpu.memory_space<vmem>>, %arg6: memref<4x1xf32, #tpu.memory_space<vmem>>, %arg7: memref<2x4x256xf32, #tpu.memory_space<vmem>>, %arg8: memref<4x1xf32, #tpu.memory_space<vmem>>, %arg9: memref<4x1xf32, #tpu.memory_space<vmem>>, %arg10: memref<4x1xf32, #tpu.memory_space<vmem>>, %arg11: memref<4x1xf32, #tpu.memory_space<vmem>>) attributes {dimension_semantics = [#tpu.dimension_semantics<parallel>, #tpu.dimension_semantics<arbitrary>, #tpu.dimension_semantics<arbitrary>, #tpu.dimension_semantics<arbitrary>], iteration_bounds = array<i64: 1, 2, 1, 1>, scalar_prefetch = 0 : i64, scratch_operands = 4 : i64, tpu.core_type = #tpu.core_type<tc>, window_params = [{transform_indices = @transform_0, window_bounds = array<i64: 2, 4, 256>}, {transform_indices = @transform_1, window_bounds = array<i64: 4, 1>}, {transform_indices = @transform_2, window_bounds = array<i64: 4, 1>}, {transform_indices = @transform_3, window_bounds = array<i64: 2, 4, 256>}]} {
    %c0_i32 = arith.constant 0 : i32
    %0 = arith.cmpi eq, %arg1, %c0_i32 : i32
    %c0_i32_0 = arith.constant 0 : i32
    %1 = arith.cmpi eq, %arg2, %c0_i32_0 : i32
    %2 = arith.andi %0, %1 : i1
    %c0_i32_1 = arith.constant 0 : i32
    %3 = arith.cmpi eq, %arg3, %c0_i32_1 : i32
    %4 = arith.andi %2, %3 : i1
    %5 = arith.extui %4 : i1 to i32
    %c0_i32_2 = arith.constant 0 : i32
    %6 = arith.cmpi ne, %5, %c0_i32_2 : i32
    scf.if %6 {
      %cst = arith.constant 0.000000e+00 : f32
      %20 = vector.broadcast %cst : f32 to vector<4x1xf32>
      %c0 = arith.constant 0 : index
      %c0_10 = arith.constant 0 : index
      %21 = vector.load %arg8[%c0, %c0_10] : memref<4x1xf32, #tpu.memory_space<vmem>>, vector<4x1xf32>
      tpu.vector_store %arg8[%c0, %c0_10], %20 {strides = array<i32>} : memref<4x1xf32, #tpu.memory_space<vmem>>, vector<4x1xf32>,
      %cst_11 = arith.constant 0.000000e+00 : f32
      %22 = vector.broadcast %cst_11 : f32 to vector<4x1xf32>
      %c0_12 = arith.constant 0 : index
      %c0_13 = arith.constant 0 : index
      %23 = vector.load %arg9[%c0_12, %c0_13] : memref<4x1xf32, #tpu.memory_space<vmem>>, vector<4x1xf32>
      tpu.vector_store %arg9[%c0_12, %c0_13], %22 {strides = array<i32>} : memref<4x1xf32, #tpu.memory_space<vmem>>, vector<4x1xf32>,
    } else {
    }
    %c0_i32_3 = arith.constant 0 : i32
    %7 = arith.cmpi eq, %arg1, %c0_i32_3 : i32
    %8 = arith.extui %7 : i1 to i32
    %c0_i32_4 = arith.constant 0 : i32
    %9 = arith.cmpi ne, %8, %c0_i32_4 : i32
    scf.if %9 {
      %c0 = arith.constant 0 : index
      %c0_10 = arith.constant 0 : index
      %c0_11 = arith.constant 0 : index
      %20 = vector.load %arg4[%c0, %c0_10, %c0_11] : memref<2x4x256xf32, #tpu.memory_space<vmem>>, vector<2x4x256xf32>
      %cst = arith.constant dense<0.000000e+00> : vector<2x4xf32>
      %21 = vector.multi_reduction <add>, %20, %cst [2] : vector<2x4x256xf32> to vector<2x4xf32>
      %22 = vector.shape_cast %21 : vector<2x4xf32> to vector<2x4x1xf32>
      %23 = arith.mulf %20, %20 : vector<2x4x256xf32>
      %cst_12 = arith.constant dense<0.000000e+00> : vector<2x4xf32>
      %24 = vector.multi_reduction <add>, %23, %cst_12 [2] : vector<2x4x256xf32> to vector<2x4xf32>
      %25 = vector.shape_cast %24 : vector<2x4xf32> to vector<2x4x1xf32>
      %c0_13 = arith.constant 0 : index
      %c0_14 = arith.constant 0 : index
      %26 = vector.load %arg8[%c0_13, %c0_14] : memref<4x1xf32, #tpu.memory_space<vmem>>, vector<4x1xf32>
      %cst_15 = arith.constant dense<0.000000e+00> : vector<4x1xf32>
      %27 = vector.multi_reduction <add>, %22, %cst_15 [0] : vector<2x4x1xf32> to vector<4x1xf32>
      %28 = arith.addf %26, %27 : vector<4x1xf32>
      %c0_16 = arith.constant 0 : index
      %c0_17 = arith.constant 0 : index
      %29 = vector.load %arg8[%c0_16, %c0_17] : memref<4x1xf32, #tpu.memory_space<vmem>>, vector<4x1xf32>
      tpu.vector_store %arg8[%c0_16, %c0_17], %28 {strides = array<i32>} : memref<4x1xf32, #tpu.memory_space<vmem>>, vector<4x1xf32>,
      %c0_18 = arith.constant 0 : index
      %c0_19 = arith.constant 0 : index
      %30 = vector.load %arg9[%c0_18, %c0_19] : memref<4x1xf32, #tpu.memory_space<vmem>>, vector<4x1xf32>
      %cst_20 = arith.constant dense<0.000000e+00> : vector<4x1xf32>
      %31 = vector.multi_reduction <add>, %25, %cst_20 [0] : vector<2x4x1xf32> to vector<4x1xf32>
      %32 = arith.addf %30, %31 : vector<4x1xf32>
      %c0_21 = arith.constant 0 : index
      %c0_22 = arith.constant 0 : index
      %33 = vector.load %arg9[%c0_21, %c0_22] : memref<4x1xf32, #tpu.memory_space<vmem>>, vector<4x1xf32>
      tpu.vector_store %arg9[%c0_21, %c0_22], %32 {strides = array<i32>} : memref<4x1xf32, #tpu.memory_space<vmem>>, vector<4x1xf32>,
    } else {
    }
    %c1_i32 = arith.constant 1 : i32
    %10 = arith.cmpi eq, %arg1, %c1_i32 : i32
    %c0_i32_5 = arith.constant 0 : i32
    %11 = arith.cmpi eq, %arg2, %c0_i32_5 : i32
    %12 = arith.andi %10, %11 : i1
    %c0_i32_6 = arith.constant 0 : i32
    %13 = arith.cmpi eq, %arg3, %c0_i32_6 : i32
    %14 = arith.andi %12, %13 : i1
    %15 = arith.extui %14 : i1 to i32
    %c0_i32_7 = arith.constant 0 : i32
    %16 = arith.cmpi ne, %15, %c0_i32_7 : i32
    scf.if %16 {
      %c0 = arith.constant 0 : index
      %c0_10 = arith.constant 0 : index
      %20 = vector.load %arg8[%c0, %c0_10] : memref<4x1xf32, #tpu.memory_space<vmem>>, vector<4x1xf32>
      %cst = arith.constant 5.120000e+02 : f32
      %21 = vector.broadcast %cst : f32 to vector<4x1xf32>
      %22 = arith.divf %20, %21 : vector<4x1xf32>
      %c0_11 = arith.constant 0 : index
      %c0_12 = arith.constant 0 : index
      %23 = vector.load %arg9[%c0_11, %c0_12] : memref<4x1xf32, #tpu.memory_space<vmem>>, vector<4x1xf32>
      %cst_13 = arith.constant 5.120000e+02 : f32
      %24 = vector.broadcast %cst_13 : f32 to vector<4x1xf32>
      %25 = arith.divf %23, %24 : vector<4x1xf32>
      %26 = arith.mulf %22, %22 : vector<4x1xf32>
      %27 = arith.subf %25, %26 : vector<4x1xf32>
      %cst_14 = arith.constant 0.000000e+00 : f32
      %28 = vector.broadcast %cst_14 : f32 to vector<4x1xf32>
      %29 = arith.maximumf %27, %28 : vector<4x1xf32>
      %cst_15 = arith.constant 9.99999974E-6 : f32
      %30 = vector.broadcast %cst_15 : f32 to vector<4x1xf32>
      %31 = arith.addf %29, %30 : vector<4x1xf32>
      %32 = math.rsqrt %31 : vector<4x1xf32>
      %c0_16 = arith.constant 0 : index
      %c0_17 = arith.constant 0 : index
      %33 = vector.load %arg5[%c0_16, %c0_17] : memref<4x1xf32, #tpu.memory_space<vmem>>, vector<4x1xf32>
      %34 = arith.mulf %32, %33 : vector<4x1xf32>
      %c0_18 = arith.constant 0 : index
      %c0_19 = arith.constant 0 : index
      %35 = vector.load %arg10[%c0_18, %c0_19] : memref<4x1xf32, #tpu.memory_space<vmem>>, vector<4x1xf32>
      tpu.vector_store %arg10[%c0_18, %c0_19], %34 {strides = array<i32>} : memref<4x1xf32, #tpu.memory_space<vmem>>, vector<4x1xf32>,
      %c0_20 = arith.constant 0 : index
      %c0_21 = arith.constant 0 : index
      %36 = vector.load %arg6[%c0_20, %c0_21] : memref<4x1xf32, #tpu.memory_space<vmem>>, vector<4x1xf32>
      %37 = arith.mulf %22, %34 : vector<4x1xf32>
      %38 = arith.subf %36, %37 : vector<4x1xf32>
      %c0_22 = arith.constant 0 : index
      %c0_23 = arith.constant 0 : index
      %39 = vector.load %arg11[%c0_22, %c0_23] : memref<4x1xf32, #tpu.memory_space<vmem>>, vector<4x1xf32>
      tpu.vector_store %arg11[%c0_22, %c0_23], %38 {strides = array<i32>} : memref<4x1xf32, #tpu.memory_space<vmem>>, vector<4x1xf32>,
    } else {
    }
    %c1_i32_8 = arith.constant 1 : i32
    %17 = arith.cmpi eq, %arg1, %c1_i32_8 : i32
    %18 = arith.extui %17 : i1 to i32
    %c0_i32_9 = arith.constant 0 : i32
    %19 = arith.cmpi ne, %18, %c0_i32_9 : i32
    scf.if %19 {
      %c0 = arith.constant 0 : index
      %c0_10 = arith.constant 0 : index
      %c0_11 = arith.constant 0 : index
      %20 = vector.load %arg4[%c0, %c0_10, %c0_11] : memref<2x4x256xf32, #tpu.memory_space<vmem>>, vector<2x4x256xf32>
      %c0_12 = arith.constant 0 : index
      %c0_13 = arith.constant 0 : index
      %21 = vector.load %arg10[%c0_12, %c0_13] : memref<4x1xf32, #tpu.memory_space<vmem>>, vector<4x1xf32>
      %22 = vector.shape_cast %21 : vector<4x1xf32> to vector<1x4x1xf32>
      %23 = vector.broadcast %22 : vector<1x4x1xf32> to vector<2x4x256xf32>
      %24 = arith.mulf %20, %23 : vector<2x4x256xf32>
      %c0_14 = arith.constant 0 : index
      %c0_15 = arith.constant 0 : index
      %25 = vector.load %arg11[%c0_14, %c0_15] : memref<4x1xf32, #tpu.memory_space<vmem>>, vector<4x1xf32>
      %26 = vector.shape_cast %25 : vector<4x1xf32> to vector<1x4x1xf32>
      %27 = vector.broadcast %26 : vector<1x4x1xf32> to vector<2x4x256xf32>
      %28 = arith.addf %24, %27 : vector<2x4x256xf32>
      %cst = arith.constant 5.000000e-01 : f32
      %29 = vector.broadcast %cst : f32 to vector<2x4x256xf32>
      %30 = arith.mulf %29, %28 : vector<2x4x256xf32>
      %cst_16 = arith.constant 0.707106769 : f32
      %31 = vector.broadcast %cst_16 : f32 to vector<2x4x256xf32>
      %32 = arith.mulf %28, %31 : vector<2x4x256xf32>
      %33 = math.erf %32 : vector<2x4x256xf32>
      %cst_17 = arith.constant 1.000000e+00 : f32
      %34 = vector.broadcast %cst_17 : f32 to vector<2x4x256xf32>
      %35 = arith.addf %34, %33 : vector<2x4x256xf32>
      %36 = arith.mulf %30, %35 : vector<2x4x256xf32>
      %c0_18 = arith.constant 0 : index
      %c0_19 = arith.constant 0 : index
      %c0_20 = arith.constant 0 : index
      %37 = vector.load %arg7[%c0_18, %c0_19, %c0_20] : memref<2x4x256xf32, #tpu.memory_space<vmem>>, vector<2x4x256xf32>
      tpu.vector_store %arg7[%c0_18, %c0_19, %c0_20], %36 {strides = array<i32>} : memref<2x4x256xf32, #tpu.memory_space<vmem>>, vector<2x4x256xf32>,
    } else {
    }
    return
  }
  func.func @transform_0(%arg0: i32, %arg1: i32, %arg2: i32, %arg3: i32) -> (i32, i32, i32) {
    %c0_i32 = arith.constant 0 : i32
    return %arg2, %arg0, %arg3 : i32, i32, i32
  }
  func.func @transform_1(%arg0: i32, %arg1: i32, %arg2: i32, %arg3: i32) -> (i32, i32) {
    %c0_i32 = arith.constant 0 : i32
    %c0_i32_0 = arith.constant 0 : i32
    return %arg0, %c0_i32 : i32, i32
  }
  func.func @transform_2(%arg0: i32, %arg1: i32, %arg2: i32, %arg3: i32) -> (i32, i32) {
    %c0_i32 = arith.constant 0 : i32
    %c0_i32_0 = arith.constant 0 : i32
    return %arg0, %c0_i32 : i32, i32
  }
  func.func @transform_3(%arg0: i32, %arg1: i32, %arg2: i32, %arg3: i32) -> (i32, i32, i32) {
    %0 = arith.muli %arg2, %arg1 : i32
    %1 = arith.muli %arg3, %arg1 : i32
    %c0_i32 = arith.constant 0 : i32
    return %0, %arg0, %1 : i32, i32, i32
  }
}

</mosaic_0001>

<bundles_post_ra>
// kernel: tpu_custom_call.1
= control target key start
LH: loop header
LB: loop body
LE: loop exit
PB: predicated region body
PF: predicated region fallthrough
CT: control target
= control target key end

     0   :  { %8 = vsyncpa [#allocation7], 0  ;;  %s851_s0 = inlined_call_operand.hbm [shape: f32[2,4,256], index: 0, kind: input, shape index: {}]   ;;  %s852_s1 = inlined_call_operand.vmem [shape: f32[4,1], index: 1, kind: input, shape index: {}]   ;;  %s853_s2 = inlined_call_operand.vmem [shape: f32[4,1], index: 2, kind: input, shape index: {}]   ;;  %s854_s3 = inlined_call_operand.hbm [shape: f32[2,4,256], index: 3, kind: output, shape index: {}]  }
   0x1   :  { %9 = vsyncpa [#allocation8], 0 }
   0x2   :  { %11 = vsyncpa [#allocation8 + $0x1], 0  ;;  %s731_s12 = smov 0   ;;  %s733_s13 = smov 0  }
   0x3   :  { %s735_s14 = smov 0  }
   0x4 LB: > { %s531_s15 = sadd.s32 4294967295, %s700_s14   ;;  %s532_s16 = sadd.s32 4294967294, %s700_s14   ;;  %s700_s14 = sphi %s735_s14, %s17_s14   ;;  %s696_s13 = sphi %s733_s13, %s865_s13   ;;  %s692_s12 = sphi %s731_s12, %s864_s12  }
   0x5   : > { %s39_s17 = sadd.s32 1, %s696_s13  ;;  %p533_p0 = scmp.ge.s32.totalorder %s700_s14, 1 }
   0x6   : > { %p41_p1 = scmp.ge.s32.totalorder %s39_s17, 2  ;;  %p164_p2 = scmp.lt.s32.totalorder %s700_s14, 3 }
   0x7   : > { %p753_p3 = scmp.eq.s32.totalorder %s531_s15, 0  ;;  %s702_s20 = smov [#allocation6]  }
   0x8   : > { %s867_s17 = smov (%p41_p1, %s39_s17), 0  ;;  %p759_p4 = pnand %p533_p0, %p164_p2 }
   0x9   : > { %s858_s18 = scalar_select %p753_p3, 1, 0 }
   0xa   : > { %s859_s19 = scalar_select %p759_p4, 1, 0 }
   0xb   : > { %s184_s21 = sshll.u32 %s702_s20, 4  ;;  %p561_p5 = pneg %p759_p4  ;;  %s185_s21 = int_to_ptr.vmem [resolvable:$true] %s184_s21 }
   0xc   : > { %s616_s25 = scalar_lea.hbm %s851_s0, 256 }
   0xd   : > { %p767_p6 = pnand %p753_p3, %p561_p5  ;;  %p617_p7 = scmp.ne.s32.totalorder %s851_s0, %s616_s25 }
   0xe   : > { %p623_p11 = scmp.lt.u32.totalorder %s616_s25, %s851_s0 }
   0xf   : > { %p618_p8 = pneg %p767_p6 }
  0x11   : > { %p619_p9 = pnand %p618_p8, %p617_p7 }
  0x13   : > { %p620_p10 = pneg %p619_p9 }
  0x15   : > { %p625_p12 = pnand %p623_p11, %p620_p10 }
  0x17   : > { %628 = shalt.err (!%p625_p12)
}
  0x18   : > { %s629_s30 = scalar_lea.vmem %s185_s21, 256  ;;  %p637_p2 = scmp.lt.s32.totalorder %s185_s21, %s185_s21 }
  0x19   : > { %p630_p13 = scmp.ne.s32.totalorder %s185_s21, %s629_s30  ;;  %p638_p5 = scmp.lt.s32.totalorder %s629_s30, %s629_s30 }
  0x1b   : > { %p632_p0 = pnand %p630_p13, %p618_p8  ;;  %p639_p3 = por %p638_p5, %p637_p2 }
  0x1d   : > { %p633_p1 = pneg %p632_p0 }
  0x1f   : > { %p640_p4 = pnand %p639_p3, %p633_p1 }
  0x21   : > { %643 = shalt.err (!%p640_p4)
}
  0x22   : > { %s703_s4 = smov 128   ;;  %s704_s5 = smov 8  }
  0x23   : > { %564 = dma.hbm_to_vmem [thread:$0]  (!%p767_p6), %s851_s0, 256, %s185_s21, [#allocation7], %s703_s4, %s703_s4, %s704_s5  }
  0x24   : > { %p861_p7 = scmp.ne.s32.totalorder %s859_s19, 0 }
  0x25   : > { %p862_p9 = scmp.ne.s32.totalorder (!%p861_p7), %s858_s18, 0 }
  0x26   : > { %214 = sbr.rel (%p861_p7) target bundleno = 431 (0x1af), region = 32 }
  0x2d   : > { %683 = dma.done.wait (%p862_p9), [#allocation7], 256  }
  0x2e   : > { %685 = vsyncadd (%p862_p9), [#allocation7], 4294967040  ;;  %p255_p3 = scmp.eq.s32.totalorder %s692_s12, 0 }
  0x2f   : > { %vm264_vm0 = vcmask (%p255_p3), 3072   ;;  %v705_v0 = vmov (%p255_p3), 0.0  }
  0x30   : > { %263 = sbr.rel (!%p255_p3) target bundleno = 55 (0x37), region = 40  ;;  %265 = vst.msk [vmem:[#allocation2] sm:$0xf] (%p255_p3), %vm264_vm0, %v705_v0  ;;  %266 = vst.msk [vmem:[#allocation3] sm:$0xf] (%p255_p3), %vm264_vm0, %v705_v0 }
  0x37 PF: > { %p541_p4 = scmp.ne.s32.totalorder %s692_s12, 0 }
  0x38   : > { %v270_v1 = vld [vmem:[#allocation6] sm:$0xff] (!%p541_p4)  ;;  %vm278_vm1 = vcmask (!%p541_p4), 1043456   ;;  %v271_v2 = vld [vmem:[#allocation6 + $0x8] sm:$0xff] (!%p541_p4)  ;;  %v307_v25 = vld [vmem:[#allocation2] sm:$0xf] (!%p541_p4)  ;;  %vm312_vm2 = vcmask (!%p541_p4), 3072  }
  0x39   : > { %269 = sbr.rel (%p541_p4) target bundleno = 216 (0xd8), region = 44  ;;  %v274_v3 = vcombine.high (!%p541_p4), %v270_v1, %v270_v1  ;;  %v279_v4 = vsel (!%p541_p4), %vm278_vm1, %v270_v1, 0.0  ;;  %v289_v5 = vmul.f32 (!%p541_p4), %v270_v1, %v270_v1  ;;  %v275_v6 = vcombine.high (!%p541_p4), %v271_v2, %v271_v2  ;;  %v314_v30 = vld [vmem:[#allocation3] sm:$0xf] (!%p541_p4) }
  0x3a   : > { %v284_v7 = vsel (!%p541_p4), %vm278_vm1, %v271_v2, 0.0  ;;  %v290_v8 = vmul.f32 (!%p541_p4), %v271_v2, %v271_v2 }
  0x3b   : > { %v280_v9 = vsel (!%p541_p4), %vm278_vm1, %v274_v3, 0.0  ;;  %v293_v10 = vcombine.high (!%p541_p4), %v289_v5, %v289_v5  ;;  %v297_v11 = vsel (!%p541_p4), %vm278_vm1, %v289_v5, 0.0  ;;  %v285_v12 = vsel (!%p541_p4), %vm278_vm1, %v275_v6, 0.0 }
  0x3c   : > { %v281_v13 = vadd.f32 (!%p541_p4), %v280_v9, %v279_v4  ;;  %v294_v14 = vcombine.high (!%p541_p4), %v290_v8, %v290_v8  ;;  %v302_v16 = vsel (!%p541_p4), %vm278_vm1, %v290_v8, 0.0  ;;  %v286_v18 = vadd.f32 (!%p541_p4), %v285_v12, %v284_v7 }
  0x3d   : > { %v298_v15 = vsel (!%p541_p4), %vm278_vm1, %v293_v10, 0.0 }
  0x3e   : > { %282 = vadd.xlane.f32.xlu0 (!%p541_p4), %v281_v13  ;;  %v299_v17 = vadd.f32 (!%p541_p4), %v298_v15, %v297_v11  ;;  %v303_v19 = vsel (!%p541_p4), %vm278_vm1, %v294_v14, 0.0 }
  0x3f   : > { %v304_v20 = vadd.f32 (!%p541_p4), %v303_v19, %v302_v16 }
  0x40   : > { %300 = vadd.xlane.f32.xlu1 %v299_v17 }
  0x42   : > { %287 = vadd.xlane.f32.xlu0 %v286_v18 }
  0x44   : > { %305 = vadd.xlane.f32.xlu1 %v304_v20 }
  0xcb   : > { %v283_v21 = vpop.xlane.xlu0 %282 }
  0xcc   : > { %v308_v24 = vsel %vm278_vm1, %v283_v21, 0.0 }
  0xcd   : > { %v301_v22 = vpop.xlane.xlu1 %300 }
  0xce   : > { %v315_v29 = vsel %vm278_vm1, %v301_v22, 0.0 }
  0xcf   : > { %v288_v23 = vpop.xlane.xlu0 %287 }
  0xd0   : > { %v309_v26 = vsel %vm278_vm1, %v288_v23, 0.0 }
  0xd1   : > { %v310_v27 = vadd.f32 %v309_v26, %v308_v24  ;;  %v306_v28 = vpop.xlane.xlu1 %305 }
  0xd2   : > { %v316_v31 = vsel %vm278_vm1, %v306_v28, 0.0 }
  0xd3   : > { %v311_v32 = vadd.f32 %v310_v27, %v307_v25  ;;  %v317_v33 = vadd.f32 %v316_v31, %v315_v29 }
  0xd5   : > { %313 = vst.msk [vmem:[#allocation2] sm:$0xf] %vm312_vm2, %v311_v32  ;;  %v318_v34 = vadd.f32 %v317_v33, %v314_v30 }
  0xd7   : > { %319 = vst.msk [vmem:[#allocation3] sm:$0xf] %vm312_vm2, %v318_v34 }
  0xd8 PF: > { %p320_p6 = scmp.eq.s32.totalorder %s692_s12, 1 }
  0xd9   : > { %v337_v43 = vld [vmem:[%s852_s1] sm:$0xf] (%p320_p6)  ;;  %vm339_vm3 = vcmask (%p320_p6), 3072  }
  0xda   : > { %326 = sbr.rel (!%p320_p6) target bundleno = 249 (0xf9), region = 48  ;;  %v341_v46 = vld [vmem:[%s853_s2] sm:$0xf] (%p320_p6) }
  0xdc   : > { %v327_v35 = vld [vmem:[#allocation2] sm:$0xf] (%p320_p6) }
  0xdd   : > { %v329_v37 = vmul.f32 (%p320_p6), 0.001953125, %v327_v35 }
  0xde   : > { %v330_v36 = vld [vmem:[#allocation3] sm:$0xf] (%p320_p6) }
  0xdf   : > { %v331_v38 = vmul.f32 (%p320_p6), 0.001953125, %v330_v36  ;;  %v332_v39 = vmul.f32 (%p320_p6), %v329_v37, %v329_v37 }
  0xe1   : > { %v333_v40 = vsub.f32 %v331_v38, %v332_v39 }
  0xe3   : > { %v334_v41 = vmax.f32 %v333_v40, 0.0 }
  0xe5   : > { %v335_v42 = vadd.f32 1e-05, %v334_v41 }
  0xe7   : > { %609 = vrsqrt.f32 %v335_v42 }
  0xf1   : > { %v610_v44 = vpop.eup %609 }
  0xf2   : > { %v338_v45 = vmul.f32 %v610_v44, %v337_v43 }
  0xf4   : > { %340 = vst.msk [vmem:[#allocation4] sm:$0xf] %vm339_vm3, %v338_v45  ;;  %v342_v47 = vmul.f32 %v338_v45, %v329_v37 }
  0xf6   : > { %v343_v48 = vsub.f32 %v341_v46, %v342_v47 }
  0xf8   : > { %344 = vst.msk [vmem:[#allocation5] sm:$0xf] %vm339_vm3, %v343_v48 }
  0xf9 PF: > { %p544_p8 = scmp.ne.s32.totalorder %s692_s12, 1 }
  0xfa   : > { %v706_v50 = vmov (!%p544_p8), 0   ;;  %v707_v52 = vmov (!%p544_p8), 839922192   ;;  %v358_v54 = vlaneseq (!%p544_p8)  ;;  %v348_v60 = vld [vmem:[#allocation6] sm:$0xff] (!%p544_p8)  ;;  %v349_v61 = vld [vmem:[#allocation6 + $0x8] sm:$0xff] (!%p544_p8) }
  0xfb   : > { %347 = sbr.rel (%p544_p8) target bundleno = 407 (0x197), region = 52  ;;  %v350_v49 = vld [vmem:[#allocation4] sm:$0xf] (!%p544_p8)  ;;  %611 = vset.pattern.permute.xlu0 (!%p544_p8), %v706_v50  ;;  %v356_v53 = vunpack.c.l.s4 (!%p544_p8), %v707_v52 }
  0xfc   : > { %353 = vperm.xlu0 (!%p544_p8), %611, %v350_v49   ;;  %v359_v56 = vshrl.u32 (!%p544_p8), %v358_v54, 7 }
  0xfd   : > { %v357_v55 = vunpack.c.0.s8 (!%p544_p8), %v356_v53 }
  0xff   : > { %v365_v51 = vld [vmem:[#allocation5] sm:$0xf] (!%p544_p8)  ;;  %v360_v57 = vsub.s32 (!%p544_p8), %v357_v55, %v359_v56 }
 0x100   : > { %368 = vperm.xlu0 (!%p544_p8), %611, %v365_v51  }
 0x17b   : > { %v354_v58 = vpop.permute.xlu0 %353 }
 0x17c   : > { %v361_v59 = vrot.slane %v354_v58, %v360_v57 }
 0x17e   : > { %v363_v63 = vmul.f32 %v361_v59, %v348_v60  ;;  %v364_v0 = vmul.f32 %v361_v59, %v349_v61 }
 0x17f   : > { %v369_v62 = vpop.permute.xlu0 %368 }
 0x180   : > { %v376_v1 = vrot.slane %v369_v62, %v360_v57 }
 0x182   : > { %v378_v2 = vadd.f32 %v376_v1, %v363_v63  ;;  %v379_v3 = vadd.f32 %v376_v1, %v364_v0 }
 0x184   : > { %v382_v4 = vmul.f32 0.70710677, %v378_v2  ;;  %v383_v5 = vmul.f32 0.70710677, %v379_v3  ;;  %v380_v8 = vmul.f32 0.5, %v378_v2  ;;  %v381_v10 = vmul.f32 0.5, %v379_v3 }
 0x186   : > { %612 = verf.f32 %v382_v4 }
 0x187   : > { %614 = verf.f32 %v383_v5 }
 0x190   : > { %v613_v6 = vpop.eup %612 }
 0x191   : > { %v615_v7 = vpop.eup %614  ;;  %v386_v9 = vadd.f32 1.0, %v613_v6 }
 0x192   : > { %v387_v11 = vadd.f32 1.0, %v615_v7 }
 0x193   : > { %v388_v12 = vmul.f32 %v386_v9, %v380_v8 }
 0x194   : > { %v389_v13 = vmul.f32 %v387_v11, %v381_v10 }
 0x195   : > { %390 = vst [vmem:[#allocation9] sm:$0xff] %v388_v12 }
 0x196   : > { %391 = vst [vmem:[#allocation9 + $0x8] sm:$0xff] %v389_v13 }
 0x197 PF: > { %p817_p10 = scmp.eq.s32.totalorder %s531_s15, 1  ;;  %s708_s18 = smov [#allocation9]  }
 0x198   : > { %s413_s19 = sshll.u32 %s708_s18, 4  ;;  %s414_s19 = int_to_ptr.vmem [resolvable:$true] %s413_s19 }
 0x199   : > { %s644_s20 = scalar_lea.vmem %s414_s19, 256  ;;  %s650_s21 = scalar_lea.vmem %s414_s19, 512 }
 0x19a   : > { %p645_p11 = scmp.ne.s32.totalorder %s414_s19, %s644_s20  ;;  %p651_p0 = scmp.lt.s32.totalorder %s414_s19, %s414_s19 }
 0x19b   : > { %p652_p1 = scmp.lt.s32.totalorder %s650_s21, %s644_s20 }
 0x19c   : > { %p646_p12 = pnand %p645_p11, %p817_p10 }
 0x19d   : > { %p653_p2 = por %p652_p1, %p651_p0 }
 0x19e   : > { %p647_p13 = pneg %p646_p12 }
 0x1a0   : > { %p654_p5 = pnand %p653_p2, %p647_p13 }
 0x1a2   : > { %657 = shalt.err (!%p654_p5)
}
 0x1a3   : > { %s658_s23 = scalar_lea.hbm %s854_s3, 256 }
 0x1a4   : > { %p659_p7 = scmp.ne.s32.totalorder %s854_s3, %s658_s23  ;;  %p664_p4 = scmp.lt.u32.totalorder %s658_s23, %s854_s3 }
 0x1a6   : > { %p660_p9 = pnand %p659_p7, %p817_p10 }
 0x1a8   : > { %p661_p3 = pneg %p660_p9 }
 0x1aa   : > { %p666_p6 = pnand %p664_p4, %p661_p3 }
 0x1ac   : > { %669 = shalt.err (!%p666_p6)
}
 0x1ad   : > { %s709_s28 = smov 128   ;;  %s710_s29 = smov 8  }
 0x1ae   : > { %558 = dma.vmem_to_hbm [thread:$0]  (%p817_p10), %s414_s19, 256, %s854_s3, [#allocation8], %s709_s28, %s709_s28, %s710_s29  }
 0x1af PF: > { %p572_p8 = scmp.ge.s32.totalorder %s700_s14, 2  ;;  %p573_p11 = scmp.eq.s32.totalorder %s532_s16, 1 }
 0x1b1   : > { %p566_p12 = pnand %p573_p11, %p572_p8 }
 0x1b3   : > { %687 = dma.done.wait (!%p566_p12), [#allocation8], 256  }
 0x1b4   : > { %689 = vsyncadd (!%p566_p12), [#allocation8], 4294967040  ;;  %s17_s14 = sadd.s32 1, %s700_s14   ;;  %s864_s12 = smov %s696_s13 }
 0x1b5   : > { %p14_p13 = scmp.ge.s32.totalorder %s17_s14, 4   ;;  %s865_s13 = smov %s867_s17 }
 0x1b7   :  { %16 = sbr.rel (!%p14_p13) target bundleno = 4 (0x4), region = 92 }
 0x1be   :  { %434 = vsyncpa [#allocation7], 1 }
 0x1bf   :  { %436 = vsyncpa [#allocation7 + $0x1], 1 }
 0x1c0   :  { %437 = vsyncpa [#allocation8], 1 }
 0x1c1   :  { %439 = vsyncpa [#allocation8 + $0x1], 1 }

</bundles_post_ra>
